<compile_context>
chip_gen: v6e
topology: v6e:2x2x1
jax: 0.10.0
libtpu: 0.0.40
codegen_flags: <defaults>
</compile_context>

<pallas_src>
import functools

import jax
import jax.numpy as jnp
import numpy as np
from jax.experimental import pallas as pl
from jax.experimental.pallas import tpu as pltpu

MAX_DIST = 100.0


def _protopnet_loss_kernel(logits_ref, labels_ref, dists_ref, pclass_ref,
                           out_ref, *, true_batch, mask_rows):
    logits = logits_ref[...].astype(jnp.float32)      # (TB, C)
    labels = labels_ref[...].astype(jnp.int32)        # (TB, 1)
    dists = dists_ref[...].astype(jnp.float32)        # (TB, P)
    pclass = pclass_ref[...]                          # (1, P) int32

    tb, num_classes = logits.shape

    # ---- cross-entropy per-row NLL (numerically stable log-softmax) ----
    m = jnp.max(logits, axis=-1, keepdims=True)                         # (TB,1)
    z = logits - m
    lse = jnp.log(jnp.sum(jnp.exp(z), axis=-1, keepdims=True))          # (TB,1)
    class_iota = jax.lax.broadcasted_iota(jnp.int32, (tb, num_classes), 1)
    z_label = jnp.sum(jnp.where(class_iota == labels, z, 0.0),
                      axis=-1, keepdims=True)                           # (TB,1)
    nll = lse - z_label                                                 # (TB,1)

    # ---- cluster / separation per-row costs ----
    # gt mask via VPU broadcast-compare; masked entries contribute exactly 0
    # (same semantics as the reference's (MAX_DIST - d) * mask).
    is_gt = pclass == labels                                            # (TB,P)
    inv = MAX_DIST - dists                                              # (TB,P)
    gt_inv = jnp.max(jnp.where(is_gt, inv, 0.0), axis=1, keepdims=True)
    non_gt_inv = jnp.max(jnp.where(is_gt, 0.0, inv), axis=1, keepdims=True)
    clst = MAX_DIST - gt_inv                                            # (TB,1)
    sep = MAX_DIST - non_gt_inv                                         # (TB,1)

    if mask_rows:  # static flag: only emitted when the batch was padded
        row = (pl.program_id(0) * tb
               + jax.lax.broadcasted_iota(jnp.int32, (tb, 1), 0))
        valid = row < true_batch
        nll = jnp.where(valid, nll, 0.0)
        clst = jnp.where(valid, clst, 0.0)
        sep = jnp.where(valid, sep, 0.0)

    # ---- pack this tile's partial sums into one lane-dense (1,128) row ----
    lane = jax.lax.broadcasted_iota(jnp.int32, (1, 128), 1)
    out_ref[...] = (
        jnp.where(lane == 0, jnp.sum(nll, axis=0, keepdims=True), 0.0)
        + jnp.where(lane == 1, jnp.sum(clst, axis=0, keepdims=True), 0.0)
        + jnp.where(lane == 2, jnp.sum(sep, axis=0, keepdims=True), 0.0))


def _round_up(x, m):
    return -(-x // m) * m


def _pick_batch_tile(batch, num_classes, num_protos, in_itemsize,
                     vmem_budget_bytes=24 << 20):
    """Batch tile sized from a VMEM budget (double-buffered input blocks +
    f32 temporaries), multiple of 16 (bf16-safe), <= 1024, balanced across
    tiles so batch padding wastes < 16 rows per tile."""
    per_row = ((num_classes + num_protos + 1) * 2 * in_itemsize  # dbl-buffered blocks
               + (num_classes + num_protos) * 4 * 4)             # f32 temporaries
    tb_cap = max(16, min(1024, vmem_budget_bytes // max(per_row, 1)))
    tb_cap -= tb_cap % 16
    tb_cap = max(tb_cap, 16)
    num_tiles = -(-batch // tb_cap)
    tb = _round_up(-(-batch // num_tiles), 16)
    num_tiles = -(-batch // tb)
    return tb, num_tiles


def protopnet_loss(logits, min_dists, labels, proto_class_association,
                   fc_weights, *, l_clst_coef, l_sep_coef, l_l1_coef):
    """JAX/Pallas equivalent of ProtoPNetLoss.forward.

    logits                  : (B, C) float
    min_dists               : (B, P) float
    labels                  : (B,)   int
    proto_class_association : (P, C) 0/1 float (one class per prototype)
    fc_weights              : (C, P) float
    """
    B, C = logits.shape
    P = min_dists.shape[1]

    in_itemsize = max(jnp.dtype(logits.dtype).itemsize,
                      jnp.dtype(min_dists.dtype).itemsize)
    TB, num_tiles = _pick_batch_tile(B, C, P, in_itemsize)
    Bp = TB * num_tiles

    labels2d = labels.astype(jnp.int32).reshape(B, 1)
    if Bp != B:
        pad = Bp - B
        logits_p = jnp.pad(logits, ((0, pad), (0, 0)))
        labels_p = jnp.pad(labels2d, ((0, pad), (0, 0)))
        dists_p = jnp.pad(min_dists, ((0, pad), (0, 0)))
    else:
        logits_p, labels_p, dists_p = logits, labels2d, min_dists

    # Per-prototype class id (standard ProtoPNet: one-hot association rows).
    # All-zero rows map to -1 so they never match any label.
    # TODO(synk): fall back to a mask-matmul path for multi-class rows.
    assoc = proto_class_association
    has_class = jnp.any(assoc != 0, axis=1)
    proto_class = jnp.where(has_class, jnp.argmax(assoc, axis=1),
                            -1).astype(jnp.int32).reshape(1, P)

    # Explicit VMEM limit: double-buffered input blocks + f32 temporaries
    # + headroom.  Capped at 48 MiB (fits v7x's 64 MiB per-TC VMEM).
    est = (2 * TB * (C + P + 1) * in_itemsize + 5 * TB * (C + P) * 4
           + 4 * P * 4 + 2 * 128 * 4 + (1 << 20))
    vmem_limit = int(min(48 << 20, max(16 << 20, est)))

    cost = pl.CostEstimate(
        flops=int(6 * Bp * (C + P)),
        transcendentals=int(Bp * (C + 1)),
        bytes_accessed=int(Bp * C * jnp.dtype(logits.dtype).itemsize
                           + Bp * P * jnp.dtype(min_dists.dtype).itemsize
                           + Bp * 4 + P * 4 + num_tiles * 128 * 4),
    )

    kernel = functools.partial(_protopnet_loss_kernel,
                               true_batch=B, mask_rows=(Bp != B))

    out_rows = pl.pallas_call(
        kernel,
        out_shape=jax.ShapeDtypeStruct((num_tiles, 128), jnp.float32),
        grid_spec=pltpu.PrefetchScalarGridSpec(
            num_scalar_prefetch=0,
            grid=(num_tiles,),
            in_specs=[
                pl.BlockSpec((TB, C), lambda i: (i, 0)),
                pl.BlockSpec((TB, 1), lambda i: (i, 0)),
                pl.BlockSpec((TB, P), lambda i: (i, 0)),
                pl.BlockSpec((1, P), lambda i: (0, 0)),
            ],
            out_specs=pl.BlockSpec((1, 128), lambda i: (i, 0)),
        ),
        compiler_params=pltpu.CompilerParams(
            dimension_semantics=("parallel",),
            vmem_limit_bytes=vmem_limit),
        cost_estimate=cost,
    )(logits_p, labels_p, dists_p, proto_class)

    totals = jnp.sum(out_rows, axis=0)            # tiny (num_tiles,128) reduce
    inv_b = 1.0 / B
    l_y = totals[0] * inv_b
    l_clst_raw = totals[1] * inv_b
    l_sep_raw = totals[2] * inv_b

    loss_dict = {'l_y': l_y}
    if l_clst_coef != 0 and l_sep_coef != 0:
        loss_dict['l_clst'] = l_clst_coef * l_clst_raw
        loss_dict['l_sep'] = l_sep_coef * l_sep_raw
        loss_dict['_l_clst_raw'] = l_clst_raw
        loss_dict['_l_sep_raw'] = l_sep_raw
    if l_l1_coef > 0:
        # Tiny (C, P) reduction kept out of the kernel so the grid-invariant
        # fc_weights block never occupies VMEM across the whole grid.
        l1 = jnp.sum(jnp.abs(fc_weights * (1.0 - assoc.T)))
        loss_dict['l_l1'] = l_l1_coef * l1
    return loss_dict


def _reference_loss(logits, min_dists, labels, assoc, fc_weights,
                    l_clst_coef, l_sep_coef, l_l1_coef):
    """Pure-JAX reference mirroring the PyTorch module."""
    B = logits.shape[0]
    lse = jax.nn.logsumexp(logits, axis=-1)
    l_y = jnp.mean(lse - logits[jnp.arange(B), labels])

    gt_mask = assoc[:, labels].T                                   # (B, P)
    inv = MAX_DIST - min_dists
    l_clst = jnp.mean(MAX_DIST - jnp.max(inv * gt_mask, axis=1))
    l_sep = jnp.mean(MAX_DIST - jnp.max(inv * (1.0 - gt_mask), axis=1))
    l1 = jnp.sum(jnp.abs(fc_weights * (1.0 - assoc.T)))

    return {
        'l_y': l_y,
        'l_clst': l_clst_coef * l_clst,
        'l_sep': l_sep_coef * l_sep,
        '_l_clst_raw': l_clst,
        '_l_sep_raw': l_sep,
        'l_l1': l_l1_coef * l1,
    }


if __name__ == "__main__":
    key = jax.random.PRNGKey(0)
    k1, k2, k3, k4 = jax.random.split(key, 4)

    B, C, P = 8, 4, 16          # batch, num_classes, num_prototypes
    logits = jax.random.normal(k1, (B, C), jnp.float32)
    min_dists = jax.random.uniform(k2, (B, P), jnp.float32, 0.0, 10.0)
    labels = jax.random.randint(k3, (B,), 0, C)
    # prototype p is associated with class (p % C)  ->  P // C protos per class
    proto_class_association = (
        (jnp.arange(P)[:, None] % C) == jnp.arange(C)[None, :]
    ).astype(jnp.float32)                                          # (P, C)
    fc_weights = jax.random.normal(k4, (C, P), jnp.float32)        # (C, P)

    l_clst_coef, l_sep_coef, l_l1_coef = 0.8, -0.08, 1e-4

    out = protopnet_loss(logits, min_dists, labels, proto_class_association,
                         fc_weights, l_clst_coef=l_clst_coef,
                         l_sep_coef=l_sep_coef, l_l1_coef=l_l1_coef)
    out = jax.tree_util.tree_map(jax.block_until_ready, out)

    ref = _reference_loss(logits, min_dists, labels, proto_class_association,
                          fc_weights, l_clst_coef, l_sep_coef, l_l1_coef)

    for k in ref:
        np.testing.assert_allclose(np.asarray(out[k]), np.asarray(ref[k]),
                                   rtol=1e-5, atol=1e-5)

    print("KERNEL_OK")
</pallas_src>

<mosaic_0001>
module attributes {stable_mosaic.version = 11 : i64} {
  func.func @_protopnet_loss_kernel(%arg0: i32, %arg1: memref<16x4xf32, #tpu.memory_space<vmem>>, %arg2: memref<16x1xi32, #tpu.memory_space<vmem>>, %arg3: memref<16x16xf32, #tpu.memory_space<vmem>>, %arg4: memref<1x16xi32, #tpu.memory_space<vmem>>, %arg5: memref<1x128xf32, #tpu.memory_space<vmem>>) attributes {dimension_semantics = [#tpu.dimension_semantics<parallel>], iteration_bounds = array<i64: 1>, scalar_prefetch = 0 : i64, scratch_operands = 0 : i64, tpu.core_type = #tpu.core_type<tc>, window_params = [{transform_indices = @transform_0, window_bounds = array<i64: 16, 4>}, {transform_indices = @transform_1, window_bounds = array<i64: 16, 1>}, {transform_indices = @transform_2, window_bounds = array<i64: 16, 16>}, {pipeline_mode = #tpu.pipeline_mode<synchronous>, transform_indices = @transform_3, window_bounds = array<i64: 1, 16>}, {transform_indices = @transform_4, window_bounds = array<i64: 1, 128>}]} {
    %c0 = arith.constant 0 : index
    %c0_0 = arith.constant 0 : index
    %0 = vector.load %arg1[%c0, %c0_0] : memref<16x4xf32, #tpu.memory_space<vmem>>, vector<16x4xf32>
    %c0_1 = arith.constant 0 : index
    %c0_2 = arith.constant 0 : index
    %1 = vector.load %arg2[%c0_1, %c0_2] : memref<16x1xi32, #tpu.memory_space<vmem>>, vector<16x1xi32>
    %c0_3 = arith.constant 0 : index
    %c0_4 = arith.constant 0 : index
    %2 = vector.load %arg3[%c0_3, %c0_4] : memref<16x16xf32, #tpu.memory_space<vmem>>, vector<16x16xf32>
    %c0_5 = arith.constant 0 : index
    %c0_6 = arith.constant 0 : index
    %3 = vector.load %arg4[%c0_5, %c0_6] : memref<1x16xi32, #tpu.memory_space<vmem>>, vector<1x16xi32>
    %cst = arith.constant dense<0xFF800000> : vector<16xf32>
    %4 = vector.multi_reduction <maximumf>, %0, %cst [1] : vector<16x4xf32> to vector<16xf32>
    %5 = vector.shape_cast %4 : vector<16xf32> to vector<16x1xf32>
    %6 = vector.broadcast %5 : vector<16x1xf32> to vector<16x4xf32>
    %7 = arith.subf %0, %6 : vector<16x4xf32>
    %8 = math.exp %7 : vector<16x4xf32>
    %cst_7 = arith.constant dense<0.000000e+00> : vector<16xf32>
    %9 = vector.multi_reduction <add>, %8, %cst_7 [1] : vector<16x4xf32> to vector<16xf32>
    %10 = vector.shape_cast %9 : vector<16xf32> to vector<16x1xf32>
    %11 = math.log %10 : vector<16x1xf32>
    %12 = tpu.iota {dimensions = array<i32: 1>} : vector<16x4xi32>
    %13 = vector.broadcast %1 : vector<16x1xi32> to vector<16x4xi32>
    %14 = arith.cmpi eq, %12, %13 : vector<16x4xi32>
    %cst_8 = arith.constant 0.000000e+00 : f32
    %15 = vector.broadcast %cst_8 : f32 to vector<16x4xf32>
    %16 = arith.select %14, %7, %15 : vector<16x4xi1>, vector<16x4xf32>
    %cst_9 = arith.constant dense<0.000000e+00> : vector<16xf32>
    %17 = vector.multi_reduction <add>, %16, %cst_9 [1] : vector<16x4xf32> to vector<16xf32>
    %18 = vector.shape_cast %17 : vector<16xf32> to vector<16x1xf32>
    %19 = arith.subf %11, %18 : vector<16x1xf32>
    %20 = vector.broadcast %3 : vector<1x16xi32> to vector<16x16xi32>
    %21 = vector.broadcast %1 : vector<16x1xi32> to vector<16x16xi32>
    %22 = arith.cmpi eq, %20, %21 : vector<16x16xi32>
    %cst_10 = arith.constant 1.000000e+02 : f32
    %23 = vector.broadcast %cst_10 : f32 to vector<16x16xf32>
    %24 = arith.subf %23, %2 : vector<16x16xf32>
    %cst_11 = arith.constant 0.000000e+00 : f32
    %25 = vector.broadcast %cst_11 : f32 to vector<16x16xf32>
    %26 = arith.select %22, %24, %25 : vector<16x16xi1>, vector<16x16xf32>
    %cst_12 = arith.constant dense<0xFF800000> : vector<16xf32>
    %27 = vector.multi_reduction <maximumf>, %26, %cst_12 [1] : vector<16x16xf32> to vector<16xf32>
    %28 = vector.shape_cast %27 : vector<16xf32> to vector<16x1xf32>
    %cst_13 = arith.constant 0.000000e+00 : f32
    %29 = vector.broadcast %cst_13 : f32 to vector<16x16xf32>
    %30 = arith.select %22, %29, %24 : vector<16x16xi1>, vector<16x16xf32>
    %cst_14 = arith.constant dense<0xFF800000> : vector<16xf32>
    %31 = vector.multi_reduction <maximumf>, %30, %cst_14 [1] : vector<16x16xf32> to vector<16xf32>
    %32 = vector.shape_cast %31 : vector<16xf32> to vector<16x1xf32>
    %cst_15 = arith.constant 1.000000e+02 : f32
    %33 = vector.broadcast %cst_15 : f32 to vector<16x1xf32>
    %34 = arith.subf %33, %28 : vector<16x1xf32>
    %cst_16 = arith.constant 1.000000e+02 : f32
    %35 = vector.broadcast %cst_16 : f32 to vector<16x1xf32>
    %36 = arith.subf %35, %32 : vector<16x1xf32>
    %c16_i32 = arith.constant 16 : i32
    %37 = arith.muli %arg0, %c16_i32 : i32
    %38 = tpu.iota {dimensions = array<i32: 0>} : vector<16x1xi32>
    %39 = vector.broadcast %37 : i32 to vector<16x1xi32>
    %40 = arith.addi %39, %38 : vector<16x1xi32>
    %c8_i32 = arith.constant 8 : i32
    %41 = vector.broadcast %c8_i32 : i32 to vector<16x1xi32>
    %42 = arith.cmpi slt, %40, %41 : vector<16x1xi32>
    %cst_17 = arith.constant 0.000000e+00 : f32
    %43 = vector.broadcast %cst_17 : f32 to vector<16x1xf32>
    %44 = arith.select %42, %19, %43 : vector<16x1xi1>, vector<16x1xf32>
    %cst_18 = arith.constant 0.000000e+00 : f32
    %45 = vector.broadcast %cst_18 : f32 to vector<16x1xf32>
    %46 = arith.select %42, %34, %45 : vector<16x1xi1>, vector<16x1xf32>
    %cst_19 = arith.constant 0.000000e+00 : f32
    %47 = vector.broadcast %cst_19 : f32 to vector<16x1xf32>
    %48 = arith.select %42, %36, %47 : vector<16x1xi1>, vector<16x1xf32>
    %49 = tpu.iota {dimensions = array<i32: 1>} : vector<1x128xi32>
    %c0_i32 = arith.constant 0 : i32
    %50 = vector.broadcast %c0_i32 : i32 to vector<1x128xi32>
    %51 = arith.cmpi eq, %49, %50 : vector<1x128xi32>
    %cst_20 = arith.constant dense<0.000000e+00> : vector<1xf32>
    %52 = vector.multi_reduction <add>, %44, %cst_20 [0] : vector<16x1xf32> to vector<1xf32>
    %53 = vector.shape_cast %52 : vector<1xf32> to vector<1x1xf32>
    %cst_21 = arith.constant 0.000000e+00 : f32
    %54 = vector.shape_cast %53 : vector<1x1xf32> to vector<1x1xf32>
    %55 = vector.broadcast %54 : vector<1x1xf32> to vector<1x128xf32>
    %56 = vector.broadcast %cst_21 : f32 to vector<1x128xf32>
    %57 = arith.select %51, %55, %56 : vector<1x128xi1>, vector<1x128xf32>
    %c1_i32 = arith.constant 1 : i32
    %58 = vector.broadcast %c1_i32 : i32 to vector<1x128xi32>
    %59 = arith.cmpi eq, %49, %58 : vector<1x128xi32>
    %cst_22 = arith.constant dense<0.000000e+00> : vector<1xf32>
    %60 = vector.multi_reduction <add>, %46, %cst_22 [0] : vector<16x1xf32> to vector<1xf32>
    %61 = vector.shape_cast %60 : vector<1xf32> to vector<1x1xf32>
    %cst_23 = arith.constant 0.000000e+00 : f32
    %62 = vector.shape_cast %61 : vector<1x1xf32> to vector<1x1xf32>
    %63 = vector.broadcast %62 : vector<1x1xf32> to vector<1x128xf32>
    %64 = vector.broadcast %cst_23 : f32 to vector<1x128xf32>
    %65 = arith.select %59, %63, %64 : vector<1x128xi1>, vector<1x128xf32>
    %66 = arith.addf %57, %65 : vector<1x128xf32>
    %c2_i32 = arith.constant 2 : i32
    %67 = vector.broadcast %c2_i32 : i32 to vector<1x128xi32>
    %68 = arith.cmpi eq, %49, %67 : vector<1x128xi32>
    %cst_24 = arith.constant dense<0.000000e+00> : vector<1xf32>
    %69 = vector.multi_reduction <add>, %48, %cst_24 [0] : vector<16x1xf32> to vector<1xf32>
    %70 = vector.shape_cast %69 : vector<1xf32> to vector<1x1xf32>
    %cst_25 = arith.constant 0.000000e+00 : f32
    %71 = vector.shape_cast %70 : vector<1x1xf32> to vector<1x1xf32>
    %72 = vector.broadcast %71 : vector<1x1xf32> to vector<1x128xf32>
    %73 = vector.broadcast %cst_25 : f32 to vector<1x128xf32>
    %74 = arith.select %68, %72, %73 : vector<1x128xi1>, vector<1x128xf32>
    %75 = arith.addf %66, %74 : vector<1x128xf32>
    %c0_26 = arith.constant 0 : index
    %c0_27 = arith.constant 0 : index
    %76 = vector.load %arg5[%c0_26, %c0_27] : memref<1x128xf32, #tpu.memory_space<vmem>>, vector<1x128xf32>
    tpu.vector_store %arg5[%c0_26, %c0_27], %75 {strides = array<i32>} : memref<1x128xf32, #tpu.memory_space<vmem>>, vector<1x128xf32>,
    return
  }
  func.func @transform_0(%arg0: i32) -> (i32, i32) {
    %c0_i32 = arith.constant 0 : i32
    %c0_i32_0 = arith.constant 0 : i32
    return %arg0, %c0_i32 : i32, i32
  }
  func.func @transform_1(%arg0: i32) -> (i32, i32) {
    %c0_i32 = arith.constant 0 : i32
    %c0_i32_0 = arith.constant 0 : i32
    return %arg0, %c0_i32 : i32, i32
  }
  func.func @transform_2(%arg0: i32) -> (i32, i32) {
    %c0_i32 = arith.constant 0 : i32
    %c0_i32_0 = arith.constant 0 : i32
    return %arg0, %c0_i32 : i32, i32
  }
  func.func @transform_3(%arg0: i32) -> (i32, i32) {
    %c0_i32 = arith.constant 0 : i32
    %c0_i32_0 = arith.constant 0 : i32
    %c0_i32_1 = arith.constant 0 : i32
    return %c0_i32, %c0_i32_0 : i32, i32
  }
  func.func @transform_4(%arg0: i32) -> (i32, i32) {
    %c0_i32 = arith.constant 0 : i32
    %c0_i32_0 = arith.constant 0 : i32
    return %arg0, %c0_i32 : i32, i32
  }
}

</mosaic_0001>

<bundles_post_ra>
// kernel: tpu_custom_call.1
= control target key start
LH: loop header
LB: loop body
LE: loop exit
PB: predicated region body
PF: predicated region fallthrough
CT: control target
= control target key end

     0   :  { %vm25_vm0 = vcmask 31744   ;;  %s231_s0 = inlined_call_operand.vmem [shape: f32[16,4], index: 0, kind: input, shape index: {}]   ;;  %s232_s1 = inlined_call_operand.vmem [shape: s32[16,1], index: 1, kind: input, shape index: {}]   ;;  %s233_s2 = inlined_call_operand.vmem [shape: f32[16,16], index: 2, kind: input, shape index: {}]   ;;  %s234_s3 = inlined_call_operand.vmem [shape: s32[1,16], index: 3, kind: input, shape index: {}]   ;;  %s235_s4 = inlined_call_operand.hbm [shape: f32[1,128], index: 4, kind: output, shape index: {}]  }
   0x1   :  { %v18_v0 = vld [vmem:[%s231_s0] sm:$0xff] }
   0x2   :  { %9 = vsyncpa [#allocation3], 0  ;;  %v26_v1 = vsel %vm25_vm0, %v18_v0, -inf  ;;  %v186_v2 = vmov 0   ;;  %v20_v3 = vld [vmem:[%s232_s1] sm:$0xff]  ;;  %v48_v7 = vlaneseq  ;;  %vm78_vm3 = vcmask 130048  }
   0x3   :  { %159 = vset.pattern.permute.xlu0 %v186_v2  ;;  %v22_v10 = vld [vmem:[%s233_s2] sm:$0xff]  ;;  %s187_s1 = smov [#allocation2]  }
   0x4   :  { %27 = vmax.xlane.f32.xlu0 %v26_v1  ;;  %v49_v8 = vand.u32 127, %v48_v7  ;;  %v156_v11 = vld [vmem:[%s234_s3] ss:$0 sm:$0xff]  ;;  %v74_v13 = vsub.f32 100.0, %v22_v10  ;;  %s148_s2 = sshll.u32 %s187_s1, 4  ;;  %s149_s2 = int_to_ptr.vmem [resolvable:$true] %s148_s2 }
   0x5   :  { %s164_s3 = scalar_lea.vmem %s149_s2, 16  ;;  %s168_s22 = scalar_lea.vmem %s149_s2, 32 }
   0x6   :  { %vm112_vm4 = vcmp.eq.s32.totalorder %v49_v8, 0  ;;  %vm121_vm5 = vcmp.eq.s32.totalorder %v49_v8, 1  ;;  %vm131_vm6 = vcmp.eq.s32.totalorder %v49_v8, 2  ;;  %p165_p0 = scmp.ne.s32.totalorder %s149_s2, %s164_s3  ;;  %p169_p1 = scmp.lt.s32.totalorder %s149_s2, %s149_s2 }
   0x7   :  { %p170_p2 = scmp.lt.s32.totalorder %s168_s22, %s164_s3 }
   0x9   :  { %p171_p3 = por %p170_p2, %p169_p1 }
   0xb   :  { %p172_p4 = pnand %p171_p3, %p165_p0 }
  0x1a   :  { %51 = vperm.xlu0 %159, %v20_v3  }
  0x8d   :  { %v28_v4 = vpop.xlane.xlu0 %27 }
  0x8e   :  { %v32_v5 = vsub.f32 %v18_v0, %v28_v4 }
  0x90   :  { %v34_v6 = vmul.f32 1.442695, %v32_v5 }
  0x92   :  { %160 = vpow2.f32 %v34_v6 }
  0x95   :  { %v52_v9 = vpop.permute.xlu0 %51 }
  0x96   :  { %vm56_vm1 = vcmp.eq.s32.totalorder %v49_v8, %v52_v9  ;;  %vm72_vm2 = vcmp.eq.s32.totalorder %v156_v11, %v52_v9 }
  0x97   :  { %v58_v15 = vsel %vm56_vm1, %v32_v5, 0.0  ;;  %v76_v16 = vsel %vm72_vm2, %v74_v13, 0.0  ;;  %v85_v19 = vsel %vm72_vm2, 0.0, %v74_v13 }
  0x98   :  { %v60_v17 = vsel %vm25_vm0, %v58_v15, 0.0  ;;  %v79_v18 = vsel %vm78_vm3, %v76_v16, -inf  ;;  %v87_v20 = vsel %vm78_vm3, %v85_v19, -inf }
  0x9f   :  { %v161_v12 = vpop.eup %160 }
  0xa0   :  { %v38_v14 = vsel %vm25_vm0, %v161_v12, 0.0 }
  0xa1   :  { %39 = vadd.xlane.f32.xlu1 %v38_v14 }
  0xa5   :  { %61 = vadd.xlane.f32.xlu1 %v60_v17 }
  0xa9   :  { %80 = vmax.xlane.f32.xlu1 %v79_v18 }
  0xad   :  { %88 = vmax.xlane.f32.xlu1 %v87_v20 }
 0x12a   :  { %v40_v21 = vpop.xlane.xlu1 %39 }
 0x12b   :  { %162 = vlog2.f32 %v40_v21 }
 0x12e   :  { %v62_v22 = vpop.xlane.xlu1 %61 }
 0x132   :  { %v81_v23 = vpop.xlane.xlu1 %80 }
 0x133   :  { %v93_v24 = vsub.f32 100.0, %v81_v23 }
 0x135   :  { %v123_v25 = vrot.slane %v93_v24, 4 }
 0x136   :  { %v89_v26 = vpop.xlane.xlu1 %88 }
 0x137   :  { %v124_v27 = vadd.f32 %v123_v25, %v93_v24  ;;  %v95_v28 = vsub.f32 100.0, %v89_v26 }
 0x138   :  { %v163_v29 = vpop.eup %162 }
 0x139   :  { %v45_v30 = vmul.f32 0.6931472, %v163_v29  ;;  %v125_v31 = vrot.slane %v124_v27, 2  ;;  %v133_v32 = vrot.slane %v95_v28, 4 }
 0x13b   :  { %v66_v33 = vsub.f32 %v45_v30, %v62_v22  ;;  %v134_v34 = vadd.f32 %v133_v32, %v95_v28  ;;  %v126_v36 = vadd.f32 %v125_v31, %v124_v27 }
 0x13d   :  { %v114_v35 = vrot.slane %v66_v33, 4  ;;  %v135_v37 = vrot.slane %v134_v34, 2  ;;  %v127_v41 = vrot.slane %v126_v36, 1 }
 0x13f   :  { %v115_v38 = vadd.f32 %v114_v35, %v66_v33  ;;  %v136_v39 = vadd.f32 %v135_v37, %v134_v34  ;;  %v128_v45 = vadd.f32 %v127_v41, %v126_v36 }
 0x141   :  { %v116_v40 = vrot.slane %v115_v38, 2  ;;  %v137_v43 = vrot.slane %v136_v39, 1  ;;  %v129_v49 = vsel %vm121_vm5, %v128_v45, 0.0 }
 0x143   :  { %v117_v42 = vadd.f32 %v116_v40, %v115_v38  ;;  %v138_v47 = vadd.f32 %v137_v43, %v136_v39 }
 0x145   :  { %v118_v44 = vrot.slane %v117_v42, 1  ;;  %v139_v51 = vsel %vm131_vm6, %v138_v47, 0.0 }
 0x147   :  { %v119_v46 = vadd.f32 %v118_v44, %v117_v42 }
 0x149   :  { %v120_v48 = vsel %vm112_vm4, %v119_v46, 0.0 }
 0x14a   :  { %v130_v50 = vadd.f32 %v129_v49, %v120_v48 }
 0x14c   :  { %v140_v52 = vadd.f32 %v139_v51, %v130_v50 }
 0x14e   :  { %141 = vst [vmem:[#allocation2] sm:$0x1] %v140_v52 }
 0x14f   :  { %175 = shalt.err (!%p172_p4)
}
 0x150   :  { %151 = dma.vmem_to_hbm [thread:$0]  %s149_s2, 16, %s235_s4, [#allocation3]  }
 0x151   :  { %184 = dma.done.wait [#allocation3], 16  }
 0x152   :  { %185 = vsyncadd [#allocation3], 4294967280 }
 0x153   :  { %155 = vsyncpa [#allocation3], 1 }

</bundles_post_ra>
